<compile_context>
chip_gen: v7x
topology: tpu7x:2x2x1
jax: 0.10.0
libtpu: 0.0.40
codegen_flags: <defaults>
</compile_context>

<pallas_src>
import jax
import jax.numpy as jnp
from jax import lax
from jax.experimental import pallas as pl
from jax.experimental.pallas import tpu as pltpu

KSIZE = 3  # kernel_size=3, stride=1, padding=1 (the module's defaults)


def _make_dwconv_kernel(H, W, nb):
    """Kernel over a block of `nb` flattened planes of length L = H*W."""
    L = H * W
    P = W + 1  # in-VMEM zero padding on each side of the flattened lane axis

    def kernel(w_ref, b_ref, ml_ref, mr_ref, x_ref, o_ref, xpad_ref):
        # w_ref:  SMEM (9,)      flattened 3x3 weight (scalar-prefetched)
        # b_ref:  SMEM (1,)      bias (scalar-prefetched)
        # ml_ref: VMEM (1, L)    mask killing dj=-1 taps at w == 0
        # mr_ref: VMEM (1, L)    mask killing dj=+1 taps at w == W-1
        # x_ref:  VMEM (nb, L)   nb flattened input planes
        # o_ref:  VMEM (nb, L)   nb flattened output planes
        # xpad_ref: VMEM (nb, L + 2P) f32 scratch (zero borders = conv padding)

        # Zero borders (acts as the conv's zero padding), then place the block
        # interior.  VMEM-only traffic; no padded copy ever touches HBM.
        xpad_ref[...] = jnp.zeros(xpad_ref.shape, dtype=xpad_ref.dtype)
        xpad_ref[:, P:P + L] = x_ref[...].astype(jnp.float32)

        # Hoisted edge masks, broadcast once and reused by all taps.
        m_left = jnp.broadcast_to(ml_ref[...], (nb, L))
        m_right = jnp.broadcast_to(mr_ref[...], (nb, L))

        acc = jnp.full((nb, L), b_ref[0], dtype=jnp.float32)
        for di in (-1, 0, 1):
            for dj in (-1, 0, 1):
                k = w_ref[(di + 1) * KSIZE + (dj + 1)]
                s = di * W + dj                      # flattened tap offset
                t = xpad_ref[:, P + s:P + s + L]     # shifted lane-slice
                if dj == -1:
                    t = t * m_left                   # w-1 invalid at w == 0
                elif dj == 1:
                    t = t * m_right                  # w+1 invalid at w == W-1
                acc = acc + k * t
        o_ref[...] = acc.astype(o_ref.dtype)

    return kernel


def depthwise_conv_forward(x, weight, bias, *, block_planes=None):
    """x: (B, C, H, W); weight: (3, 3); bias: (1,) -> (B, C, H, W)."""
    B, C, H, W = x.shape
    N = B * C
    L = H * W
    P = W + 1

    # Flatten each plane onto the lane axis (row-major => free reshape).
    flat = x.reshape(N, L)

    # Planes per block: ~512 KiB of f32 input per step, multiple of 8 sublanes,
    # and keep >= 2 grid steps when N allows so both v7x TensorCores get work.
    if block_planes is None:
        nb = max(8, (512 * 1024) // (4 * L) // 8 * 8)
        if N >= 16:
            nb = min(nb, max(8, (N // 2) // 8 * 8))
        nb = min(nb, N)
    else:
        nb = block_planes
    if nb < N:
        nb = max(8, nb // 8 * 8)  # (8, 128) sublane rule when tiling N
    n_pad = pl.cdiv(N, nb) * nb
    if n_pad != N:
        flat = jnp.pad(flat, ((0, n_pad - N), (0, 0)))
    grid = (n_pad // nb,)

    # Horizontal-edge masks over the flattened lane axis (computed host-side).
    col = jnp.arange(L, dtype=jnp.int32) % W
    m_left = (col >= 1).astype(jnp.float32).reshape(1, L)       # for dj = -1
    m_right = (col <= W - 2).astype(jnp.float32).reshape(1, L)  # for dj = +1

    w_flat = weight.reshape(KSIZE * KSIZE).astype(jnp.float32)
    b = bias.reshape(1).astype(jnp.float32)

    kernel = _make_dwconv_kernel(H, W, nb)
    out = pl.pallas_call(
        kernel,
        out_shape=jax.ShapeDtypeStruct((n_pad, L), x.dtype),
        grid_spec=pltpu.PrefetchScalarGridSpec(
            num_scalar_prefetch=2,           # weight + bias land in SMEM
            grid=grid,
            in_specs=[
                pl.BlockSpec((1, L), lambda n, w, b: (0, 0)),    # m_left
                pl.BlockSpec((1, L), lambda n, w, b: (0, 0)),    # m_right
                pl.BlockSpec((nb, L), lambda n, w, b: (n, 0)),   # planes
            ],
            out_specs=pl.BlockSpec((nb, L), lambda n, w, b: (n, 0)),
            scratch_shapes=[pltpu.VMEM((nb, L + 2 * P), jnp.float32)],
        ),
        compiler_params=pltpu.CompilerParams(
            dimension_semantics=("parallel",),
        ),
    )(w_flat, b, m_left, m_right, flat)

    if n_pad != N:
        out = out[:N]
    return out.reshape(B, C, H, W)


def _reference(x, weight, bias):
    """Pure-JAX reference: Conv2d(1,1,3,stride=1,padding=1) on (B*C,1,H,W)."""
    B, C, H, W = x.shape
    xin = x.reshape(B * C, 1, H, W)
    w = weight.reshape(1, 1, KSIZE, KSIZE)
    y = lax.conv_general_dilated(
        xin, w, window_strides=(1, 1), padding=((1, 1), (1, 1)),
        dimension_numbers=("NCHW", "OIHW", "NCHW"))
    y = y + bias.reshape(1, 1, 1, 1)
    return y.reshape(B, C, H, W)


if __name__ == "__main__":
    B, C, H, W = 2, 4, 16, 16

    key = jax.random.PRNGKey(0)
    kx, kw, kb = jax.random.split(key, 3)

    x = jax.random.normal(kx, (B, C, H, W), dtype=jnp.float32)

    # Deterministic parameter init mimicking nn.Conv2d: U(-1/sqrt(fan_in), +...)
    fan_in = 1 * KSIZE * KSIZE
    bound = 1.0 / (fan_in ** 0.5)
    weight = jax.random.uniform(kw, (KSIZE, KSIZE), jnp.float32, -bound, bound)
    bias = jax.random.uniform(kb, (1,), jnp.float32, -bound, bound)

    out = depthwise_conv_forward(x, weight, bias)
    out = jax.block_until_ready(out)

    ref = _reference(x, weight, bias)
    assert out.shape == (B, C, H, W)
    assert jnp.allclose(out, ref, atol=1e-5, rtol=1e-5), "mismatch vs reference"

    print("KERNEL_OK")
</pallas_src>

<mosaic_0001>
module attributes {stable_mosaic.version = 11 : i64} {
  func.func @kernel(%arg0: i32, %arg1: memref<9xf32, #tpu.memory_space<smem>>, %arg2: memref<1xf32, #tpu.memory_space<smem>>, %arg3: memref<1x256xf32, #tpu.memory_space<vmem>>, %arg4: memref<1x256xf32, #tpu.memory_space<vmem>>, %arg5: memref<8x256xf32, #tpu.memory_space<vmem>>, %arg6: memref<8x256xf32, #tpu.memory_space<vmem>>, %arg7: memref<8x290xf32, #tpu.memory_space<vmem>>) attributes {dimension_semantics = [#tpu.dimension_semantics<parallel>], iteration_bounds = array<i64: 1>, scalar_prefetch = 2 : i64, scratch_operands = 1 : i64, tpu.core_type = #tpu.core_type<tc>, window_params = [{pipeline_mode = #tpu.pipeline_mode<synchronous>, transform_indices = @transform_0, window_bounds = array<i64: 1, 256>}, {pipeline_mode = #tpu.pipeline_mode<synchronous>, transform_indices = @transform_1, window_bounds = array<i64: 1, 256>}, {transform_indices = @transform_2, window_bounds = array<i64: 8, 256>}, {transform_indices = @transform_3, window_bounds = array<i64: 8, 256>}]} {
    %cst = arith.constant 0.000000e+00 : f32
    %0 = vector.broadcast %cst : f32 to vector<8x290xf32>
    %c0 = arith.constant 0 : index
    %c0_0 = arith.constant 0 : index
    %1 = vector.load %arg7[%c0, %c0_0] : memref<8x290xf32, #tpu.memory_space<vmem>>, vector<8x290xf32>
    tpu.vector_store %arg7[%c0, %c0_0], %0 {strides = array<i32>} : memref<8x290xf32, #tpu.memory_space<vmem>>, vector<8x290xf32>,
    %c0_1 = arith.constant 0 : index
    %c0_2 = arith.constant 0 : index
    %2 = vector.load %arg5[%c0_1, %c0_2] : memref<8x256xf32, #tpu.memory_space<vmem>>, vector<8x256xf32>
    %c0_3 = arith.constant 0 : index
    %c17 = arith.constant 17 : index
    %3 = vector.load %arg7[%c0_3, %c17] : memref<8x290xf32, #tpu.memory_space<vmem>>, vector<8x256xf32>
    tpu.vector_store %arg7[%c0_3, %c17], %2 {strides = array<i32>} : memref<8x290xf32, #tpu.memory_space<vmem>>, vector<8x256xf32>,
    %c0_4 = arith.constant 0 : index
    %c0_5 = arith.constant 0 : index
    %4 = vector.load %arg3[%c0_4, %c0_5] : memref<1x256xf32, #tpu.memory_space<vmem>>, vector<1x256xf32>
    %5 = vector.shape_cast %4 : vector<1x256xf32> to vector<1x256xf32>
    %6 = vector.broadcast %5 : vector<1x256xf32> to vector<8x256xf32>
    %c0_6 = arith.constant 0 : index
    %c0_7 = arith.constant 0 : index
    %7 = vector.load %arg4[%c0_6, %c0_7] : memref<1x256xf32, #tpu.memory_space<vmem>>, vector<1x256xf32>
    %8 = vector.shape_cast %7 : vector<1x256xf32> to vector<1x256xf32>
    %9 = vector.broadcast %8 : vector<1x256xf32> to vector<8x256xf32>
    %c0_8 = arith.constant 0 : index
    %10 = memref.load %arg2[%c0_8] : memref<1xf32, #tpu.memory_space<smem>>
    %11 = vector.broadcast %10 : f32 to vector<8x256xf32>
    %c0_9 = arith.constant 0 : index
    %12 = memref.load %arg1[%c0_9] : memref<9xf32, #tpu.memory_space<smem>>
    %c0_10 = arith.constant 0 : index
    %c0_11 = arith.constant 0 : index
    %13 = vector.load %arg7[%c0_10, %c0_11] : memref<8x290xf32, #tpu.memory_space<vmem>>, vector<8x256xf32>
    %14 = arith.mulf %13, %6 : vector<8x256xf32>
    %15 = vector.broadcast %12 : f32 to vector<8x256xf32>
    %16 = arith.mulf %15, %14 : vector<8x256xf32>
    %17 = arith.addf %11, %16 : vector<8x256xf32>
    %c1 = arith.constant 1 : index
    %18 = memref.load %arg1[%c1] : memref<9xf32, #tpu.memory_space<smem>>
    %c0_12 = arith.constant 0 : index
    %c1_13 = arith.constant 1 : index
    %19 = vector.load %arg7[%c0_12, %c1_13] : memref<8x290xf32, #tpu.memory_space<vmem>>, vector<8x256xf32>
    %20 = vector.broadcast %18 : f32 to vector<8x256xf32>
    %21 = arith.mulf %20, %19 : vector<8x256xf32>
    %22 = arith.addf %17, %21 : vector<8x256xf32>
    %c2 = arith.constant 2 : index
    %23 = memref.load %arg1[%c2] : memref<9xf32, #tpu.memory_space<smem>>
    %c0_14 = arith.constant 0 : index
    %c2_15 = arith.constant 2 : index
    %24 = vector.load %arg7[%c0_14, %c2_15] : memref<8x290xf32, #tpu.memory_space<vmem>>, vector<8x256xf32>
    %25 = arith.mulf %24, %9 : vector<8x256xf32>
    %26 = vector.broadcast %23 : f32 to vector<8x256xf32>
    %27 = arith.mulf %26, %25 : vector<8x256xf32>
    %28 = arith.addf %22, %27 : vector<8x256xf32>
    %c3 = arith.constant 3 : index
    %29 = memref.load %arg1[%c3] : memref<9xf32, #tpu.memory_space<smem>>
    %c0_16 = arith.constant 0 : index
    %c16 = arith.constant 16 : index
    %30 = vector.load %arg7[%c0_16, %c16] : memref<8x290xf32, #tpu.memory_space<vmem>>, vector<8x256xf32>
    %31 = arith.mulf %30, %6 : vector<8x256xf32>
    %32 = vector.broadcast %29 : f32 to vector<8x256xf32>
    %33 = arith.mulf %32, %31 : vector<8x256xf32>
    %34 = arith.addf %28, %33 : vector<8x256xf32>
    %c4 = arith.constant 4 : index
    %35 = memref.load %arg1[%c4] : memref<9xf32, #tpu.memory_space<smem>>
    %c0_17 = arith.constant 0 : index
    %c17_18 = arith.constant 17 : index
    %36 = vector.load %arg7[%c0_17, %c17_18] : memref<8x290xf32, #tpu.memory_space<vmem>>, vector<8x256xf32>
    %37 = vector.broadcast %35 : f32 to vector<8x256xf32>
    %38 = arith.mulf %37, %36 : vector<8x256xf32>
    %39 = arith.addf %34, %38 : vector<8x256xf32>
    %c5 = arith.constant 5 : index
    %40 = memref.load %arg1[%c5] : memref<9xf32, #tpu.memory_space<smem>>
    %c0_19 = arith.constant 0 : index
    %c18 = arith.constant 18 : index
    %41 = vector.load %arg7[%c0_19, %c18] : memref<8x290xf32, #tpu.memory_space<vmem>>, vector<8x256xf32>
    %42 = arith.mulf %41, %9 : vector<8x256xf32>
    %43 = vector.broadcast %40 : f32 to vector<8x256xf32>
    %44 = arith.mulf %43, %42 : vector<8x256xf32>
    %45 = arith.addf %39, %44 : vector<8x256xf32>
    %c6 = arith.constant 6 : index
    %46 = memref.load %arg1[%c6] : memref<9xf32, #tpu.memory_space<smem>>
    %c0_20 = arith.constant 0 : index
    %c32 = arith.constant 32 : index
    %47 = vector.load %arg7[%c0_20, %c32] : memref<8x290xf32, #tpu.memory_space<vmem>>, vector<8x256xf32>
    %48 = arith.mulf %47, %6 : vector<8x256xf32>
    %49 = vector.broadcast %46 : f32 to vector<8x256xf32>
    %50 = arith.mulf %49, %48 : vector<8x256xf32>
    %51 = arith.addf %45, %50 : vector<8x256xf32>
    %c7 = arith.constant 7 : index
    %52 = memref.load %arg1[%c7] : memref<9xf32, #tpu.memory_space<smem>>
    %c0_21 = arith.constant 0 : index
    %c33 = arith.constant 33 : index
    %53 = vector.load %arg7[%c0_21, %c33] : memref<8x290xf32, #tpu.memory_space<vmem>>, vector<8x256xf32>
    %54 = vector.broadcast %52 : f32 to vector<8x256xf32>
    %55 = arith.mulf %54, %53 : vector<8x256xf32>
    %56 = arith.addf %51, %55 : vector<8x256xf32>
    %c8 = arith.constant 8 : index
    %57 = memref.load %arg1[%c8] : memref<9xf32, #tpu.memory_space<smem>>
    %c0_22 = arith.constant 0 : index
    %c34 = arith.constant 34 : index
    %58 = vector.load %arg7[%c0_22, %c34] : memref<8x290xf32, #tpu.memory_space<vmem>>, vector<8x256xf32>
    %59 = arith.mulf %58, %9 : vector<8x256xf32>
    %60 = vector.broadcast %57 : f32 to vector<8x256xf32>
    %61 = arith.mulf %60, %59 : vector<8x256xf32>
    %62 = arith.addf %56, %61 : vector<8x256xf32>
    %c0_23 = arith.constant 0 : index
    %c0_24 = arith.constant 0 : index
    %63 = vector.load %arg6[%c0_23, %c0_24] : memref<8x256xf32, #tpu.memory_space<vmem>>, vector<8x256xf32>
    tpu.vector_store %arg6[%c0_23, %c0_24], %62 {strides = array<i32>} : memref<8x256xf32, #tpu.memory_space<vmem>>, vector<8x256xf32>,
    return
  }
  func.func @transform_0(%arg0: i32, %arg1: memref<9xf32, #tpu.memory_space<smem>>, %arg2: memref<1xf32, #tpu.memory_space<smem>>) -> (i32, i32) {
    %c0_i32 = arith.constant 0 : i32
    %c0_i32_0 = arith.constant 0 : i32
    %c0_i32_1 = arith.constant 0 : i32
    return %c0_i32, %c0_i32_0 : i32, i32
  }
  func.func @transform_1(%arg0: i32, %arg1: memref<9xf32, #tpu.memory_space<smem>>, %arg2: memref<1xf32, #tpu.memory_space<smem>>) -> (i32, i32) {
    %c0_i32 = arith.constant 0 : i32
    %c0_i32_0 = arith.constant 0 : i32
    %c0_i32_1 = arith.constant 0 : i32
    return %c0_i32, %c0_i32_0 : i32, i32
  }
  func.func @transform_2(%arg0: i32, %arg1: memref<9xf32, #tpu.memory_space<smem>>, %arg2: memref<1xf32, #tpu.memory_space<smem>>) -> (i32, i32) {
    %c0_i32 = arith.constant 0 : i32
    %c0_i32_0 = arith.constant 0 : i32
    return %arg0, %c0_i32 : i32, i32
  }
  func.func @transform_3(%arg0: i32, %arg1: memref<9xf32, #tpu.memory_space<smem>>, %arg2: memref<1xf32, #tpu.memory_space<smem>>) -> (i32, i32) {
    %c0_i32 = arith.constant 0 : i32
    %c0_i32_0 = arith.constant 0 : i32
    return %arg0, %c0_i32 : i32, i32
  }
}

</mosaic_0001>

<bundles_post_ra>
// kernel: tpu_custom_call.1
= control target key start
LH: loop header
LB: loop body
LE: loop exit
PB: predicated region body
PF: predicated region fallthrough
CT: control target
= control target key end

     0   :  { %s578_s0 = inlined_call_operand.vmem [shape: f32[9], index: 0, kind: input, shape index: {}]   ;;  %s579_s1 = inlined_call_operand.<no memory space> [shape: f32[1], index: 1, kind: input, shape index: {}]   ;;  %s580_s2 = inlined_call_operand.vmem [shape: f32[1,256], index: 2, kind: input, shape index: {}]   ;;  %s581_s3 = inlined_call_operand.vmem [shape: f32[1,256], index: 3, kind: input, shape index: {}]   ;;  %s582_s4 = inlined_call_operand.hbm [shape: f32[8,256], index: 4, kind: input, shape index: {}]   ;;  %s583_s5 = inlined_call_operand.hbm [shape: f32[8,256], index: 5, kind: output, shape index: {}]  }
   0x1   :  { %s10_s20 = sshll.u32 %s578_s0, 4  ;;  %s11_s20 = int_to_ptr.vmem [resolvable:$true] %s10_s20 }
   0x2   :  { %s364_s21 = scalar_lea.vmem %s11_s20, 16  ;;  %p369_p1 = scmp.lt.s32.totalorder %s11_s20, %s11_s20 }
   0x3   :  { %p365_p0 = scmp.ne.s32.totalorder %s11_s20, %s364_s21  ;;  %p370_p2 = scmp.lt.s32.totalorder %s364_s21, %s364_s21 }
   0x5   :  { %p371_p3 = por %p370_p2, %p369_p1 }
   0x7   :  { %p372_p4 = pnand %p371_p3, %p365_p0 }
   0x9   :  { %375 = shalt.err (!%p372_p4)  }
   0xa   :  { %s426_s22 = smov [#allocation4]  }
   0xb   :  { %13 = dma.vmem_to_smem %s11_s20, 16, %s426_s22, [#allocation3] }
   0xc   :  { %420 = dma.done.wait [#allocation3], 16 }
   0xd   :  { %421 = vsyncadd [#allocation3], 4294967280 }
   0xe   :  { %16 = sfence }
   0xf   :  { %17 = vsyncpa [#allocation7], 0 }
  0x10   :  { %18 = vsyncpa [#allocation8], 0  ;;  %s427_s23 = smov [#allocation6]   ;;  %s376_s26 = scalar_lea.hbm %s582_s4, 256 }
  0x11   :  { %s29_s24 = sshll.u32 %s427_s23, 4  ;;  %p377_p5 = scmp.ne.s32.totalorder %s582_s4, %s376_s26  ;;  %s30_s24 = int_to_ptr.vmem [resolvable:$true] %s29_s24 }
  0x12   :  { %p380_p6 = scmp.lt.u32.totalorder %s376_s26, %s582_s4 }
  0x14   :  { %p382_p7 = pnand %p380_p6, %p377_p5 }
  0x16   :  { %385 = shalt.err (!%p382_p7)
}
  0x17   :  { %s386_s6 = scalar_lea.vmem %s30_s24, 256  ;;  %p391_p9 = scmp.lt.s32.totalorder %s30_s24, %s30_s24 }
  0x18   :  { %p387_p8 = scmp.ne.s32.totalorder %s30_s24, %s386_s6  ;;  %p392_p10 = scmp.lt.s32.totalorder %s386_s6, %s386_s6 }
  0x1a   :  { %p393_p11 = por %p392_p10, %p391_p9 }
  0x1c   :  { %p394_p12 = pnand %p393_p11, %p387_p8 }
  0x1e   :  { %397 = shalt.err (!%p394_p12)
}
  0x1f   :  { %32 = dma.hbm_to_vmem [thread:$0]  %s582_s4, 256, %s30_s24, [#allocation7]  }
  0x20   :  { %422 = dma.done.wait [#allocation7], 256  }
  0x21   :  { %423 = vsyncadd [#allocation7], 4294967040  ;;  %v59_v0 = vlaneseq  ;;  %v428_v1 = vmov 0.0   ;;  %vm38_vm0 = vcmask 277504   ;;  %v40_v5 = vld [vmem:[#allocation6] sm:$0xff]  ;;  %s429_s11 = smov 17  }
  0x22   :  { %36 = vst [vmem:[#allocation2] sm:$0xff] %v428_v1  ;;  %39 = vst.msk [vmem:[#allocation2 + $0x10] sm:$0xff] %vm38_vm0, %v428_v1  ;;  %v69_v6 = vld [vmem:[%s581_s3] sm:$0x3]  ;;  %44 = vrot.lane.b32.xlu0 %v40_v5, %s429_s11  ;;  %s430_s13 = smov 2   ;;  %s431_s14 = smov 16  }
  0x23   :  { %v60_v2 = vshrl.u32 %v59_v0, 7  ;;  %v41_v8 = vld [vmem:[#allocation6 + $0x8] sm:$0xff]  ;;  %s432_s3 = smov 18   ;;  %s433_s15 = smov 32   ;;  %vm53_vm1 = vcmask 1047688   ;;  %vm48_vm2 = vcmask 138240  }
  0x24   :  { %v57_v9 = vld [vmem:[%s580_s2] sm:$0x3]  ;;  %s434_s2 = smov 34   ;;  %s341_s16 = sld [smem:[#allocation4 + $0x4]]  ;;  %vm153_vm3 = vcmask 130048   ;;  %vm120_vm4 = vcmask 15360  }
  0x25   :  { %v61_v3 = vsub.s32 0, %v60_v2  ;;  %v65_v4 = vsub.s32 1, %v60_v2  ;;  %s338_s17 = sld [smem:[#allocation4 + $0x1]]  ;;  %s344_s18 = sld [smem:[#allocation4 + $0x7]]  ;;  %vm207_vm5 = vcmask 146432   ;;  %vm240_vm6 = vcmask 261120  }
  0x26   :  { %46 = vrot.lane.b32.xlu0 %v41_v8, %s429_s11  ;;  %s435_s19 = smov 111   ;;  %s436_s20 = smov 127   ;;  %vm108_vm7 = vcmask 1039360   ;;  %vm141_vm8 = vcmask 1031168   ;;  %vm174_vm9 = vcmask 916480   ;;  %vm195_vm10 = vcmask 908288  }
  0x27   :  { %v74_v7 = vrot.slane %v69_v6, %v61_v3  ;;  %v78_v10 = vrot.slane %v69_v6, %v65_v4  ;;  %v496_v11 = vrot.slane %v57_v9, %v61_v3  ;;  %v498_v12 = vrot.slane %v57_v9, %v65_v4  ;;  %s339_s21 = sld [smem:[#allocation4 + $0x2]]  ;;  %s340_s22 = sld [smem:[#allocation4 + $0x3]] }
  0x28   :  { %s437_s23 = smov 95   ;;  %s343_s24 = sld [smem:[#allocation4 + $0x6]]  ;;  %vm228_vm11 = vcmask 900096   ;;  %vm261_vm12 = vcmask 785408   ;;  %vm282_vm13 = vcmask 777216   ;;  %vm314_vm14 = vcmask 769024  }
  0x29   :  { %116 = vrot.lane.b32.xlu1 %v74_v7, %s430_s13  ;;  %s342_s25 = sld [smem:[#allocation4 + $0x5]]  ;;  %s438_s0 = smov 126  }
  0x2a   :  { %149 = vrot.lane.b32.xlu0 %v496_v11, %s431_s14  ;;  %v182_v18 = vstv %s341_s16  ;;  %s439_s26 = smov 112   ;;  %s440_s27 = smov 96  }
  0x2b   :  { %v95_v19 = vstv %s338_s17  ;;  %v519_v28 = vstv %s344_s18  ;;  %s441_s28 = smov 110   ;;  %s345_s29 = sld [smem:[#allocation4 + $0x8]] }
  0x2c   :  { %s442_s30 = smov 94   ;;  %s81_s6 = sld [smem:[#allocation4]] }
  0x2d   :  { %118 = vrot.lane.b32.xlu1 %v78_v10, %s430_s13  ;;  %v128_v34 = vstv %s339_s21  ;;  %v161_v37 = vstv %s340_s22 }
  0x2e   :  { %203 = vrot.lane.b32.xlu0 %v74_v7, %s432_s3  ;;  %v248_v48 = vstv %s343_s24 }
  0x2f   :  { %v215_v50 = vstv %s342_s25 }
  0x31   :  { %151 = vrot.lane.b32.xlu1 %v498_v12, %s431_s14 }
  0x32   :  { %236 = vrot.lane.b32.xlu0 %v496_v11, %s433_s15 }
  0x35   :  { %205 = vrot.lane.b32.xlu1 %v78_v10, %s432_s3 }
  0x36   :  { %290 = vrot.lane.b32.xlu0 %v74_v7, %s434_s2  ;;  %v301_v7 = vstv %s345_s29 }
  0x39   :  { %238 = vrot.lane.b32.xlu1 %v498_v12, %s433_s15 }
  0x3d   :  { %292 = vrot.lane.b32.xlu1 %v78_v10, %s434_s2 }
  0x94   :  { %v45_v13 = vpop.permute.xlu0 %44 }
  0x95   :  { %54 = vst.msk [vmem:[#allocation2] sm:$0xff] %vm53_vm1, %v45_v13 }
  0x98   :  { %v47_v14 = vpop.permute.xlu0 %46 }
  0x99   :  { %v504_v15 = vsel %vm48_vm2, %v45_v13, %v47_v14  ;;  %56 = vst.msk [vmem:[#allocation2 + $0x10] sm:$0xff] %vm48_vm2, %v47_v14 }
  0x9a   :  { %v97_v27 = vmul.f32 %v95_v19, %v504_v15  ;;  %v271_v33 = vmul.f32 %v519_v28, %v504_v15  ;;  %v184_v36 = vmul.f32 %v182_v18, %v504_v15 }
  0x9b   :  { %v506_v16 = vpop.permute.xlu1 %116 }
  0x9c   :  { %v508_v17 = vld [vmem:[#allocation2] sm:$0xff]  ;;  %v150_v25 = vpop.permute.xlu0 %149 }
  0x9d   :  { %v183_v20 = vmul.f32 %v182_v18, %v508_v17  ;;  %v96_v21 = vmul.f32 %v95_v19, %v508_v17  ;;  %v270_v30 = vmul.f32 %v519_v28, %v508_v17  ;;  %v125_v32 = vmul.f32 %v506_v16, %v508_v17 }
  0x9e   :  { %v158_v35 = vmul.f32 %v150_v25, %v508_v17 }
  0x9f   :  { %189 = vrot.lane.b32.xlu1 %v183_v20, %s435_s19  ;;  %102 = vrot.lane.b32.xlu0 %v96_v21, %s436_s20  ;;  %v119_v22 = vpop.permute.xlu1 %118  ;;  %v129_v39 = vmul.f32 %v128_v34, %v125_v32  ;;  %v85_v32 = vmul.f32 %v498_v12, %v504_v15 }
  0xa0   :  { %v513_v23 = vld [vmem:[#allocation2 + $0x10] sm:$0xff]  ;;  %v204_v31 = vpop.permute.xlu0 %203  ;;  %v162_v41 = vmul.f32 %v161_v37, %v158_v35  ;;  %v121_v56 = vsel %vm120_vm4, %v506_v16, %v119_v22 }
  0xa1   :  { %v185_v24 = vmul.f32 %v182_v18, %v513_v23  ;;  %v98_v26 = vmul.f32 %v95_v19, %v513_v23  ;;  %v127_v40 = vmul.f32 %v119_v22, %v513_v23  ;;  %v212_v47 = vmul.f32 %v204_v31, %v508_v17 }
  0xa2   :  { %v126_v59 = vmul.f32 %v121_v56, %v504_v15  ;;  %v272_v8 = vmul.f32 %v519_v28, %v513_v23 }
  0xa3   :  { %193 = vrot.lane.b32.xlu1 %v185_v24, %s435_s19  ;;  %106 = vrot.lane.b32.xlu0 %v98_v26, %s436_s20  ;;  %v152_v29 = vpop.permute.xlu1 %151  ;;  %v131_v44 = vmul.f32 %v128_v34, %v127_v40  ;;  %v216_v54 = vmul.f32 %v215_v50, %v212_v47 }
  0xa4   :  { %v160_v42 = vmul.f32 %v152_v29, %v513_v23  ;;  %v237_v43 = vpop.permute.xlu0 %236  ;;  %v154_v53 = vsel %vm153_vm3, %v150_v25, %v152_v29  ;;  %v130_v1 = vmul.f32 %v128_v34, %v126_v59  ;;  %v86_v34 = vstv %s81_s6 }
  0xa5   :  { %v245_v45 = vmul.f32 %v237_v43, %v508_v17  ;;  %v159_v57 = vmul.f32 %v154_v53, %v504_v15 }
  0xa6   :  { %v164_v46 = vmul.f32 %v161_v37, %v160_v42 }
  0xa7   :  { %104 = vrot.lane.b32.xlu1 %v97_v27, %s436_s20  ;;  %276 = vrot.lane.b32.xlu0 %v270_v30, %s437_s23  ;;  %v206_v38 = vpop.permute.xlu1 %205  ;;  %v249_v51 = vmul.f32 %v248_v48, %v245_v45  ;;  %v163_v63 = vmul.f32 %v161_v37, %v159_v57  ;;  %v88_v37 = vmul.f32 %v86_v34, %v85_v32 }
  0xa8   :  { %v214_v55 = vmul.f32 %v206_v38, %v513_v23  ;;  %v208_v60 = vsel %vm207_vm5, %v204_v31, %v206_v38  ;;  %v291_v0 = vpop.permute.xlu0 %290 }
  0xa9   :  { %v213_v62 = vmul.f32 %v208_v60, %v504_v15  ;;  %v298_v4 = vmul.f32 %v291_v0, %v508_v17 }
  0xaa   :  { %v218_v61 = vmul.f32 %v215_v50, %v214_v55 }
  0xab   :  { %278 = vrot.lane.b32.xlu1 %v271_v33, %s437_s23  ;;  %191 = vrot.lane.b32.xlu0 %v184_v36, %s435_s19  ;;  %v239_v49 = vpop.permute.xlu1 %238  ;;  %v217_v5 = vmul.f32 %v215_v50, %v213_v62  ;;  %v302_v10 = vmul.f32 %v301_v7, %v298_v4  ;;  %v84_v33 = vmul.f32 %v508_v17, %v496_v11 }
  0xac   :  { %v247_v52 = vmul.f32 %v239_v49, %v513_v23  ;;  %v241_v2 = vsel %vm240_vm6, %v237_v43, %v239_v49 }
  0xad   :  { %v246_v6 = vmul.f32 %v241_v2, %v504_v15  ;;  %v87_v38 = vmul.f32 %v86_v34, %v84_v33 }
  0xae   :  { %v251_v58 = vmul.f32 %v248_v48, %v247_v52 }
  0xaf   :  { %135 = vrot.lane.b32.xlu1 %v129_v39, %s438_s0  ;;  %168 = vrot.lane.b32.xlu0 %v162_v41, %s439_s26  ;;  %v293_v3 = vpop.permute.xlu1 %292  ;;  %v250_v16 = vmul.f32 %v248_v48, %v246_v6  ;;  %v80_v39 = vstv %s579_s1  ;;  %s443_s1 = smov [#allocation9]  }
  0xb0   :  { %v294_v9 = vsel %vm38_vm0, %v291_v0, %v293_v3  ;;  %v300_v13 = vmul.f32 %v293_v3, %v513_v23  ;;  %v89_v45 = vadd.f32 %v87_v38, %v80_v39  ;;  %s329_s9 = sshll.u32 %s443_s1, 4  ;;  %s330_s9 = int_to_ptr.vmem [resolvable:$true] %s329_s9 }
  0xb1   :  { %v299_v14 = vmul.f32 %v294_v9, %v504_v15  ;;  %s398_s10 = scalar_lea.vmem %s330_s9, 256  ;;  %p403_p0 = scmp.lt.s32.totalorder %s330_s9, %s330_s9 }
  0xb2   :  { %v304_v18 = vmul.f32 %v301_v7, %v300_v13  ;;  %p399_p13 = scmp.ne.s32.totalorder %s330_s9, %s398_s10  ;;  %p404_p1 = scmp.lt.s32.totalorder %s398_s10, %s398_s10 }
  0xb3   :  { %139 = vrot.lane.b32.xlu1 %v131_v44, %s438_s0  ;;  %172 = vrot.lane.b32.xlu0 %v164_v46, %s439_s26  ;;  %v303_v19 = vmul.f32 %v301_v7, %v299_v14  ;;  %v90_v44 = vadd.f32 %v88_v37, %v80_v39 }
  0xb4   :  { %p405_p2 = por %p404_p1, %p403_p0 }
  0xb6   :  { %p406_p3 = pnand %p405_p2, %p399_p13 }
  0xb7   :  { %255 = vrot.lane.b32.xlu1 %v249_v51, %s440_s27  ;;  %222 = vrot.lane.b32.xlu0 %v216_v54, %s441_s28 }
  0xbb   :  { %259 = vrot.lane.b32.xlu1 %v251_v58, %s440_s27  ;;  %226 = vrot.lane.b32.xlu0 %v218_v61, %s441_s28 }
  0xbf   :  { %170 = vrot.lane.b32.xlu1 %v163_v63, %s439_s26  ;;  %137 = vrot.lane.b32.xlu0 %v130_v1, %s438_s0 }
  0xc3   :  { %224 = vrot.lane.b32.xlu1 %v217_v5, %s441_s28  ;;  %280 = vrot.lane.b32.xlu0 %v272_v8, %s437_s23 }
  0xc7   :  { %308 = vrot.lane.b32.xlu1 %v302_v10, %s442_s30  ;;  %257 = vrot.lane.b32.xlu0 %v250_v16, %s440_s27 }
  0xcb   :  { %312 = vrot.lane.b32.xlu1 %v304_v18, %s442_s30  ;;  %310 = vrot.lane.b32.xlu0 %v303_v19, %s442_s30 }
 0x111   :  { %v190_v20 = vpop.permute.xlu1 %189  ;;  %v103_v21 = vpop.permute.xlu0 %102 }
 0x115   :  { %v194_v22 = vpop.permute.xlu1 %193  ;;  %v107_v24 = vpop.permute.xlu0 %106 }
 0x119   :  { %v105_v25 = vpop.permute.xlu1 %104  ;;  %v277_v26 = vpop.permute.xlu0 %276 }
 0x11a   :  { %v109_v42 = vsel %vm108_vm7, %v103_v21, %v105_v25  ;;  %v110_v43 = vsel %vm108_vm7, %v105_v25, %v107_v24 }
 0x11b   :  { %v113_v15 = vadd.f32 %v109_v42, %v89_v45  ;;  %v114_v11 = vadd.f32 %v110_v43, %v90_v44 }
 0x11d   :  { %v279_v27 = vpop.permute.xlu1 %278  ;;  %v192_v28 = vpop.permute.xlu0 %191 }
 0x11e   :  { %v196_v56 = vsel %vm195_vm10, %v190_v20, %v192_v28  ;;  %v197_v57 = vsel %vm195_vm10, %v192_v28, %v194_v22  ;;  %v283_v6 = vsel %vm282_vm13, %v277_v26, %v279_v27 }
 0x121   :  { %v136_v23 = vpop.permute.xlu1 %135  ;;  %v169_v29 = vpop.permute.xlu0 %168 }
 0x125   :  { %v140_v30 = vpop.permute.xlu1 %139  ;;  %v173_v31 = vpop.permute.xlu0 %172 }
 0x129   :  { %v256_v35 = vpop.permute.xlu1 %255  ;;  %v223_v36 = vpop.permute.xlu0 %222 }
 0x12d   :  { %v260_v40 = vpop.permute.xlu1 %259  ;;  %v227_v41 = vpop.permute.xlu0 %226 }
 0x131   :  { %v171_v12 = vpop.permute.xlu1 %170  ;;  %v138_v17 = vpop.permute.xlu0 %137 }
 0x132   :  { %v142_v46 = vsel %vm141_vm8, %v136_v23, %v138_v17  ;;  %v143_v47 = vsel %vm141_vm8, %v138_v17, %v140_v30  ;;  %v175_v50 = vsel %vm174_vm9, %v169_v29, %v171_v12  ;;  %v176_v51 = vsel %vm174_vm9, %v171_v12, %v173_v31 }
 0x133   :  { %v146_v48 = vadd.f32 %v142_v46, %v113_v15  ;;  %v147_v49 = vadd.f32 %v143_v47, %v114_v11 }
 0x135   :  { %v225_v52 = vpop.permute.xlu1 %224  ;;  %v179_v53 = vadd.f32 %v175_v50, %v146_v48  ;;  %v180_v54 = vadd.f32 %v176_v51, %v147_v49  ;;  %v281_v55 = vpop.permute.xlu0 %280 }
 0x136   :  { %v229_v60 = vsel %vm228_vm11, %v223_v36, %v225_v52  ;;  %v230_v61 = vsel %vm228_vm11, %v225_v52, %v227_v41  ;;  %v284_v7 = vsel %vm282_vm13, %v279_v27, %v281_v55 }
 0x137   :  { %v200_v58 = vadd.f32 %v196_v56, %v179_v53  ;;  %v201_v59 = vadd.f32 %v197_v57, %v180_v54 }
 0x139   :  { %v309_v62 = vpop.permute.xlu1 %308  ;;  %v233_v63 = vadd.f32 %v229_v60, %v200_v58  ;;  %v234_v0 = vadd.f32 %v230_v61, %v201_v59  ;;  %v258_v1 = vpop.permute.xlu0 %257 }
 0x13a   :  { %v262_v2 = vsel %vm261_vm12, %v256_v35, %v258_v1  ;;  %v263_v3 = vsel %vm261_vm12, %v258_v1, %v260_v40 }
 0x13b   :  { %v266_v4 = vadd.f32 %v262_v2, %v233_v63  ;;  %v267_v5 = vadd.f32 %v263_v3, %v234_v0 }
 0x13d   :  { %v313_v8 = vpop.permute.xlu1 %312  ;;  %v288_v9 = vadd.f32 %v284_v7, %v267_v5  ;;  %v311_v10 = vpop.permute.xlu0 %310  ;;  %v287_v13 = vadd.f32 %v283_v6, %v266_v4 }
 0x13e   :  { %v315_v14 = vsel %vm314_vm14, %v309_v62, %v311_v10  ;;  %v316_v16 = vsel %vm314_vm14, %v311_v10, %v313_v8 }
 0x13f   :  { %v319_v18 = vadd.f32 %v315_v14, %v287_v13  ;;  %v320_v19 = vadd.f32 %v316_v16, %v288_v9 }
 0x141   :  { %321 = vst [vmem:[#allocation9] sm:$0xff] %v319_v18  ;;  %322 = vst [vmem:[#allocation9 + $0x8] sm:$0xff] %v320_v19 }
 0x142   :  { %409 = shalt.err (!%p406_p3)
}
 0x143   :  { %s410_s12 = scalar_lea.hbm %s583_s5, 256 }
 0x144   :  { %p411_p4 = scmp.ne.s32.totalorder %s583_s5, %s410_s12  ;;  %p414_p5 = scmp.lt.u32.totalorder %s410_s12, %s583_s5 }
 0x146   :  { %p416_p6 = pnand %p414_p5, %p411_p4 }
 0x148   :  { %419 = shalt.err (!%p416_p6)
}
 0x149   :  { %332 = dma.vmem_to_hbm [thread:$0]  %s330_s9, 256, %s583_s5, [#allocation8]  }
 0x14a   :  { %424 = dma.done.wait [#allocation8], 256  }
 0x14b   :  { %425 = vsyncadd [#allocation8], 4294967040 }
 0x14c   :  { %336 = vsyncpa [#allocation7], 1 }
 0x14d   :  { %337 = vsyncpa [#allocation8], 1 }

</bundles_post_ra>
